<compile_context>
chip_gen: v7x
topology: tpu7x:2x2x1
jax: 0.10.0
libtpu: 0.0.40
codegen_flags: <defaults>
</compile_context>

<pallas_src>
from functools import partial

import jax
import jax.numpy as jnp
import numpy as np
from jax import lax
from jax.experimental import pallas as pl
from jax.experimental.pallas import tpu as pltpu

HIDDEN = 100
BETA = 0.7
LANE = 128
SUBLANE = 8


def _round_up(x, m):
    return ((x + m - 1) // m) * m


def _targetnet_kernel(x_ref, w1t_ref, fb_ref, w2_ref, o_ref):
    # x_ref:   (TB, S)  bf16  batch tile
    # w1t_ref: (S, HP)  bf16  W1^T, lane-padded with zero columns (grid-resident)
    # fb_ref:  (1, HP)  f32   fused bias b1 + s - (S+1)*beta; lane H = +1 (always-on
    #                         bias lane carrying b2), remaining pad lanes = -1e30 (off)
    # w2_ref:  (1, HP)  f32   second-layer row; lane H = b2, remaining pad lanes = 0
    # o_ref:   (1, TB)  f32   lane-dense output row for this tile
    h = jnp.dot(x_ref[...], w1t_ref[...],
                preferred_element_type=jnp.float32) + fb_ref[...]       # (TB, HP)
    gate = (h > 0.0).astype(w2_ref.dtype)                               # (TB, HP)
    # Second layer as a tiny MXU contraction producing a lane-dense (1, TB) row:
    #   out[0, t] = sum_k w2[0, k] * gate[t, k]      (b2 arrives via the bias lane)
    o_ref[...] = lax.dot_general(w2_ref[...], gate,
                                 dimension_numbers=(((1,), (1,)), ((), ())),
                                 preferred_element_type=jnp.float32)    # (1, TB)


def prepare_params(w1, b1, w2, b2, beta=BETA, mxu_dtype=jnp.bfloat16):
    """One-time preprocessing of the +/-1 parameters.

    w1: (H, S), b1: (H,), w2: (1, H), b2: (1,).
    Returns lane-dense, pre-transposed, pre-fused arrays for the kernel.
    The +/-1 entries of W1 are exact in bf16, so the MXU operands ship as bf16.
    """
    h_dim, s_dim = w1.shape
    hp = _round_up(max(h_dim + 1, LANE), LANE)   # +1: reserve an always-on lane for b2
    m_beta = float((s_dim + 1) * beta)           # m = numel(x) + 1 per sample

    w1f = jnp.asarray(w1, jnp.float32)
    b1f = jnp.asarray(b1, jnp.float32)

    # s_i = #{W1[i,:] == -1} + [b1_i == -1]   (weights are exactly +/-1)
    s = jnp.sum((w1f == -1.0).astype(jnp.float32), axis=1) + (b1f == -1.0).astype(jnp.float32)
    fb = b1f + s - m_beta                        # gate: (W1 x)_i + fb_i > 0

    w1t_p = jnp.pad(jnp.transpose(w1f), ((0, 0), (0, hp - h_dim))).astype(mxu_dtype)  # (S, HP)

    fb_full = jnp.full((hp,), -1e30, jnp.float32)        # pad lanes: gate always off
    fb_full = fb_full.at[:h_dim].set(fb)
    fb_full = fb_full.at[h_dim].set(1.0)                 # bias lane: gate always on
    fb_p = fb_full.reshape(1, hp)

    w2_full = jnp.zeros((hp,), jnp.float32)
    w2_full = w2_full.at[:h_dim].set(jnp.asarray(w2, jnp.float32).reshape(-1))
    w2_full = w2_full.at[h_dim].set(jnp.asarray(b2, jnp.float32).reshape(()))   # b2 lane
    w2row = w2_full.reshape(1, hp)

    return w1t_p, fb_p, w2row


def _default_n_split():
    """Number of batch tiles to aim for: 1 on single-TensorCore chips (v5e/v6e,
    where the grid is a serial loop costing ~0.35us/step), 2 on multi-TC chips
    (v7x / megacore) so dimension_semantics=("parallel",) feeds both cores."""
    try:
        kind = jax.devices()[0].device_kind.lower()
    except Exception:
        return 2
    single_tc = ("v5 lite" in kind) or ("v5e" in kind) or ("v6" in kind)
    return 1 if single_tc else 2


def _choose_batch_tile(b, s_dim, hp, n_split, vmem_budget=8 << 20):
    """Rows per grid step. The output block's lane width equals the tile, so a
    multi-tile grid uses multiples of 128 rows (lane-dense unmasked stores); a
    single tile may be any multiple of 8 (it spans the full padded batch). The
    cap keeps the double-buffered bf16 x tile plus the f32 h/gate temporaries
    well inside v5e's 16 MiB scoped-VMEM default (v6e/v7x have >= 32 MiB)."""
    bp8 = _round_up(max(b, SUBLANE), SUBLANE)
    per_row = 2 * s_dim * 2 + 2 * hp * 4 + 2 * 4      # x dbl-buf + h/gate f32 + out
    cap = max(LANE, (vmem_budget // per_row) // LANE * LANE)
    if n_split <= 1 or bp8 <= LANE:
        want = bp8
    else:
        want = _round_up(pl.cdiv(bp8, n_split), LANE)
    return want if want <= cap else cap


@partial(jax.jit, static_argnames=("n_split",))
def _targetnet_forward(x_batch, params, *, n_split):
    w1t_p, fb_p, w2row = params
    single = jnp.ndim(x_batch) == 1
    xb = jnp.asarray(x_batch, jnp.float32)
    if single:
        xb = xb[None, :]
    b, s_dim = xb.shape
    hp = w1t_p.shape[1]

    tb = _choose_batch_tile(b, s_dim, hp, n_split)
    n_tiles = pl.cdiv(_round_up(b, SUBLANE), tb)
    bp = n_tiles * tb
    if bp != b:
        xb = jnp.pad(xb, ((0, bp - b), (0, 0)))   # padded rows are garbage, sliced off below
    xb = xb.astype(w1t_p.dtype)                   # bf16 on the wire / MXU

    out_row = pl.pallas_call(
        _targetnet_kernel,
        out_shape=jax.ShapeDtypeStruct((1, bp), jnp.float32),
        grid_spec=pltpu.PrefetchScalarGridSpec(
            num_scalar_prefetch=0,
            grid=(n_tiles,),
            in_specs=[
                pl.BlockSpec((tb, s_dim), lambda i: (i, 0)),   # x tile
                pl.BlockSpec((s_dim, hp), lambda i: (0, 0)),   # W1^T (grid-resident)
                pl.BlockSpec((1, hp), lambda i: (0, 0)),       # fused bias (+ b2 lane gate)
                pl.BlockSpec((1, hp), lambda i: (0, 0)),       # w2 row (+ b2 lane)
            ],
            out_specs=pl.BlockSpec((1, tb), lambda i: (0, i)),  # lane-dense output row
        ),
        compiler_params=pltpu.CompilerParams(
            dimension_semantics=("parallel",)),
    )(xb, w1t_p, fb_p, w2row)

    out = out_row[0, :b].reshape(b, 1)
    return out.reshape(1) if single else out


def targetnet_forward(x_batch, params, n_split=None):
    """x_batch: (B, S) or (S,). Returns (B, 1) f32 (or (1,) for a single state)."""
    if n_split is None:
        n_split = _default_n_split()
    return _targetnet_forward(x_batch, params, n_split=int(n_split))


def targetnet_reference(x_batch, w1, b1, w2, b2, beta=BETA):
    """Pure-JAX reference mirroring the PyTorch loop semantics, vmapped over batch."""
    def single(x):
        m = x.shape[0] + 1
        h = w1 @ x + b1                                              # (H,)
        s = jnp.sum((w1 == -1.0).astype(jnp.float32), axis=1) + (b1 == -1.0).astype(jnp.float32)
        theta = m * beta - s
        a = jnp.where(h > theta, 1.0, 0.0)
        return w2 @ a + b2                                           # (1,)
    if jnp.ndim(x_batch) == 1:
        return single(x_batch)
    return jax.vmap(single)(x_batch)                                 # (B, 1)


if __name__ == "__main__":
    state_dim = 32
    batch = 256  # two 128-row tiles when n_split=2

    key = jax.random.PRNGKey(0)
    k_x, k_w1, k_b1, k_w2, k_b2 = jax.random.split(key, 5)

    def pm_one(k, shape):
        return 2.0 * jax.random.bernoulli(k, 0.5, shape).astype(jnp.float32) - 1.0

    x = jax.random.normal(k_x, (batch, state_dim), dtype=jnp.float32)
    w1 = pm_one(k_w1, (HIDDEN, state_dim))
    b1 = pm_one(k_b1, (HIDDEN,))
    w2 = pm_one(k_w2, (1, HIDDEN))
    b2 = pm_one(k_b2, (1,))

    params = prepare_params(w1, b1, w2, b2)

    # Matched-precision reference: the kernel feeds x to the MXU in bf16 (the
    # +/-1 weights are exact in bf16), and the gate is a hard threshold, so the
    # reference sees the same bf16-quantized x; otherwise gates within bf16
    # rounding of the threshold could flip by a full +/-1 of output.
    x_q = x.astype(jnp.bfloat16).astype(jnp.float32)
    ref = np.asarray(targetnet_reference(x_q, w1, b1, w2, b2))

    out = jax.block_until_ready(targetnet_forward(x, params))          # device-default tiling
    assert out.shape == (batch, 1), out.shape
    assert np.allclose(np.asarray(out), ref, atol=1e-4), (
        np.max(np.abs(np.asarray(out) - ref)))

    out2 = jax.block_until_ready(targetnet_forward(x, params, n_split=2))  # multi-tile grid path
    assert np.allclose(np.asarray(out2), ref, atol=1e-4), (
        np.max(np.abs(np.asarray(out2) - ref)))

    # Single-state path (matches PyTorch's (1,) output of Linear(H, 1)).
    out1 = jax.block_until_ready(targetnet_forward(x[0], params))
    ref1 = np.asarray(targetnet_reference(x_q[0], w1, b1, w2, b2))
    assert out1.shape == (1,)
    assert np.allclose(np.asarray(out1), ref1, atol=1e-4)

    print("KERNEL_OK")
</pallas_src>

<mosaic_0001>
module attributes {stable_mosaic.version = 11 : i64} {
  func.func @_targetnet_kernel(%arg0: i32, %arg1: memref<128x32xbf16, #tpu.memory_space<vmem>>, %arg2: memref<32x128xbf16, #tpu.memory_space<vmem>>, %arg3: memref<1x128xf32, #tpu.memory_space<vmem>>, %arg4: memref<1x128xf32, #tpu.memory_space<vmem>>, %arg5: memref<1x128xf32, #tpu.memory_space<vmem>>) attributes {dimension_semantics = [#tpu.dimension_semantics<parallel>], iteration_bounds = array<i64: 2>, scalar_prefetch = 0 : i64, scratch_operands = 0 : i64, tpu.core_type = #tpu.core_type<tc>, window_params = [{transform_indices = @transform_0, window_bounds = array<i64: 128, 32>}, {pipeline_mode = #tpu.pipeline_mode<synchronous>, transform_indices = @transform_1, window_bounds = array<i64: 32, 128>}, {pipeline_mode = #tpu.pipeline_mode<synchronous>, transform_indices = @transform_2, window_bounds = array<i64: 1, 128>}, {pipeline_mode = #tpu.pipeline_mode<synchronous>, transform_indices = @transform_3, window_bounds = array<i64: 1, 128>}, {transform_indices = @transform_4, window_bounds = array<i64: 1, 128>}]} {
    %c0 = arith.constant 0 : index
    %c0_0 = arith.constant 0 : index
    %0 = vector.load %arg1[%c0, %c0_0] : memref<128x32xbf16, #tpu.memory_space<vmem>>, vector<128x32xbf16>
    %c0_1 = arith.constant 0 : index
    %c0_2 = arith.constant 0 : index
    %1 = vector.load %arg2[%c0_1, %c0_2] : memref<32x128xbf16, #tpu.memory_space<vmem>>, vector<32x128xbf16>
    %cst = arith.constant dense<0.000000e+00> : vector<128x128xf32>
    %2 = tpu.matmul %0, %1, %cst {dimension_numbers = #tpu.dot_dimension_numbers<[1], [0], [0], [1], [0, 0, 1, 1], [], []>} : vector<128x32xbf16>, vector<32x128xbf16>, vector<128x128xf32> -> vector<128x128xf32>
    %c0_3 = arith.constant 0 : index
    %c0_4 = arith.constant 0 : index
    %3 = vector.load %arg3[%c0_3, %c0_4] : memref<1x128xf32, #tpu.memory_space<vmem>>, vector<1x128xf32>
    %4 = vector.broadcast %3 : vector<1x128xf32> to vector<128x128xf32>
    %5 = arith.addf %2, %4 : vector<128x128xf32>
    %cst_5 = arith.constant 0.000000e+00 : f32
    %6 = vector.broadcast %cst_5 : f32 to vector<128x128xf32>
    %7 = arith.cmpf ogt, %5, %6 : vector<128x128xf32>
    %8 = arith.extui %7 : vector<128x128xi1> to vector<128x128xi32>
    %9 = arith.sitofp %8 : vector<128x128xi32> to vector<128x128xf32>
    %c0_6 = arith.constant 0 : index
    %c0_7 = arith.constant 0 : index
    %10 = vector.load %arg4[%c0_6, %c0_7] : memref<1x128xf32, #tpu.memory_space<vmem>>, vector<1x128xf32>
    %cst_8 = arith.constant dense<0.000000e+00> : vector<1x128xf32>
    %11 = tpu.matmul %10, %9, %cst_8 {dimension_numbers = #tpu.dot_dimension_numbers<[1], [1], [0], [0], [0, 0, 1, 0], [], []>} : vector<1x128xf32>, vector<128x128xf32>, vector<1x128xf32> -> vector<1x128xf32>
    %c0_9 = arith.constant 0 : index
    %c0_10 = arith.constant 0 : index
    %12 = vector.load %arg5[%c0_9, %c0_10] : memref<1x128xf32, #tpu.memory_space<vmem>>, vector<1x128xf32>
    tpu.vector_store %arg5[%c0_9, %c0_10], %11 {strides = array<i32>} : memref<1x128xf32, #tpu.memory_space<vmem>>, vector<1x128xf32>,
    return
  }
  func.func @transform_0(%arg0: i32) -> (i32, i32) {
    %c0_i32 = arith.constant 0 : i32
    %c0_i32_0 = arith.constant 0 : i32
    return %arg0, %c0_i32 : i32, i32
  }
  func.func @transform_1(%arg0: i32) -> (i32, i32) {
    %c0_i32 = arith.constant 0 : i32
    %c0_i32_0 = arith.constant 0 : i32
    %c0_i32_1 = arith.constant 0 : i32
    return %c0_i32, %c0_i32_0 : i32, i32
  }
  func.func @transform_2(%arg0: i32) -> (i32, i32) {
    %c0_i32 = arith.constant 0 : i32
    %c0_i32_0 = arith.constant 0 : i32
    %c0_i32_1 = arith.constant 0 : i32
    return %c0_i32, %c0_i32_0 : i32, i32
  }
  func.func @transform_3(%arg0: i32) -> (i32, i32) {
    %c0_i32 = arith.constant 0 : i32
    %c0_i32_0 = arith.constant 0 : i32
    %c0_i32_1 = arith.constant 0 : i32
    return %c0_i32, %c0_i32_0 : i32, i32
  }
  func.func @transform_4(%arg0: i32) -> (i32, i32) {
    %c0_i32 = arith.constant 0 : i32
    %c0_i32_0 = arith.constant 0 : i32
    return %c0_i32, %arg0 : i32, i32
  }
}

</mosaic_0001>

<bundles_post_ra>
// kernel: _targetnet_forward.1
= control target key start
LH: loop header
LB: loop body
LE: loop exit
PB: predicated region body
PF: predicated region fallthrough
CT: control target
= control target key end

     0   :  { %9 = vsyncpa [#allocation3], 0  ;;  %s1057_s0 = inlined_call_operand.vmem [shape: bf16[256,32], index: 0, kind: input, shape index: {}]   ;;  %s1058_s1 = inlined_call_operand.vmem [shape: bf16[32,128], index: 1, kind: input, shape index: {}]   ;;  %s1059_s2 = inlined_call_operand.vmem [shape: f32[1,128], index: 2, kind: input, shape index: {}]   ;;  %s1060_s3 = inlined_call_operand.vmem [shape: f32[1,128], index: 3, kind: input, shape index: {}]   ;;  %s1061_s4 = inlined_call_operand.hbm [shape: f32[1,256], index: 4, kind: output, shape index: {}]  }
   0x1   :  { %11 = vsyncpa [#allocation3 + $0x1], 0  ;;  %s900_s15 = smov 0   ;;  %s902_s16 = smov 0  }
   0x2   :  { %s904_s17 = smov 0   ;;  %s906_s18 = smov 0  }
   0x3 LB: > { %s586_s19 = sadd.s32 4294967295, %s868_s18   ;;  %s587_s20 = sadd.s32 4294967294, %s868_s18   ;;  %s868_s18 = sphi %s906_s18, %s1077_s18   ;;  %s864_s17 = sphi %s904_s17, %s1076_s17   ;;  %s860_s16 = sphi %s902_s16, %s1075_s16   ;;  %s856_s15 = sphi %s900_s15, %s1074_s15  }
   0x4   : > { %s923_s21 = sadd.s32 1, %s868_s18   ;;  %s113_s22 = sadd.s32 1, %s864_s17 }
   0x5   : > { %s110_s23 = ssub.s32 %s868_s18, %s923_s21  ;;  %p123_p0 = scmp.ne.s32.totalorder %s864_s17, %s860_s16 }
   0x6   : > { %p111_p1 = scmp.eq.s32.totalorder %s110_s23, 0  ;;  %p124_p2 = scmp.eq.s32.totalorder %s586_s19, 1 }
   0x7   : > { %p129_p3 = scmp.ne.s32.totalorder %s860_s16, %s856_s15  ;;  %p130_p4 = scmp.eq.s32.totalorder %s587_s20, 1 }
   0x8   : > { %s933_s24 = scalar_select %p111_p1, %s864_s17, %s113_s22  }
   0x9   : > { %p935_p5 = por %p124_p2, %p123_p0  ;;  %p939_p6 = por %p130_p4, %p129_p3 }
   0xa   : > { %p590_p7 = scmp.ge.s32.totalorder %s868_s18, 1  ;;  %p166_p8 = scmp.lt.s32.totalorder %s868_s18, 3 }
   0xc   : > { %p167_p9 = pnand %p590_p7, %p166_p8 }
   0xd   : > { %v796_v0 = vld [vmem:[%s1058_s1] sm:$0xff] (!%p167_p9)   ;;  %s948_s29 = sshll.u32 (!%p167_p9), %s586_s19, 4  ;;  %v797_v1 = vld [vmem:[%s1058_s1 + $0x8] sm:$0xff] (!%p167_p9)   ;;  %vm277_vm0 = vcmask (!%p167_p9), 261120   ;;  %v870_v10 = vmov (!%p167_p9), 0.0|0.0   ;;  %vm871_vm1 = vmmov (!%p167_p9), 0  }
   0xe   : > { %170 = sbr.rel (%p167_p9) target bundleno = 535 (0x217), region = 36  ;;  %p192_p10 = scmp.lt.s32.totalorder (!%p167_p9), %s948_s29, 31  ;;  %674 = vmatprep.subr.bf16.mxu0 (!%p167_p9), %v796_v0  ;;  %729 = vmatprep.subr.bf16.mxu1 (!%p167_p9), %v870_v10  ;;  %v872_v11 = vmov (!%p167_p9), 0.0   ;;  %v593_v12 = vld [vmem:[%s1059_s2] ss:$0 sm:$0xff] (!%p167_p9) }
   0xf   : > { %675 = vmatpush3.bf16.msra.mxu0 (!%p167_p9), %v796_v0  ;;  %726 = vmatprep.mubr.msk.f32.mxu1 (!%p167_p9), %vm871_vm1, %v872_v11  ;;  %v873_v22 = vmov (!%p167_p9), 1.0|1.0   ;;  %v447_v51 = vld [vmem:[%s1060_s3] sm:$0x1] (!%p167_p9)  ;;  %s189_s19 = sand.u32 (!%p167_p9), 1, %s860_s16   ;;  %s1017_s28 = scalar_lea.hbm (!%p167_p9), %s1061_s4, %s948_s29 }
  0x10   : > { %676 = vmatprep.subr.bf16.mxu0 (!%p167_p9), %v797_v1  ;;  %s190_s20 = scalar_lea.vmem (!%p167_p9), [#allocation2], %s189_s19  ;;  %s520_s30 = scalar_lea.sflag (!%p167_p9), [#allocation3], %s189_s19 }
  0x11   : > { %s532_s22 = sshll.u32 (!%p167_p9), %s190_s20, 4  ;;  %s1011_s22 = int_to_ptr.vmem [resolvable:$true] %s532_s22 }
  0x12   : > { %s806_s5 = scalar_lea.vmem (!%p167_p9), %s1011_s22, 16 }
  0x13   : > { %677 = vmatpush3.bf16.msra.mxu0 (!%p167_p9), %v797_v1  ;;  %p807_p11 = scmp.ne.s32.totalorder (!%p167_p9), %s1011_s22, %s806_s5 }
  0x15   : > { %s193_s6 = scalar_select %p192_p10, %s948_s29, 31 }
  0x16   : > { %p808_p12 = pnand %p807_p11, %p935_p5 }
  0x17   : > { %s592_s7 = sshll.u32 %s193_s6, 2  ;;  %s874_s6 = smov [#allocation2]  }
  0x18   : > { %s195_s10 = scalar_lea.vmem %s1057_s0, %s592_s7  ;;  %p809_p13 = pneg %p808_p12 }
  0x19   : > { %v798_v2 = vld [vmem:[%s195_s10] sm:$0xff]   ;;  %v799_v3 = vld [vmem:[%s195_s10 + $0x8] sm:$0xff]   ;;  %v800_v4 = vld [vmem:[%s195_s10 + $0x10] sm:$0xff]   ;;  %s810_s7 = sshll.u32 %s874_s6, 4  ;;  %s811_s7 = int_to_ptr.vmem [resolvable:$false] %s810_s7 }
  0x1a   : > { %678 = vmatprep.mubr.msk.bf16.mxu0 %vm277_vm0, %v798_v2  ;;  %v801_v5 = vld [vmem:[%s195_s10 + $0x18] sm:$0xff]   ;;  %v802_v6 = vld [vmem:[%s195_s10 + $0x20] sm:$0xff]   ;;  %v803_v7 = vld [vmem:[%s195_s10 + $0x28] sm:$0xff]   ;;  %s812_s8 = scalar_lea.vmem %s811_s7, 32  ;;  %p813_p0 = scmp.lt.s32.totalorder %s1011_s22, %s811_s7 }
  0x1b   : > { %679 = vmatmul.mubr.msk.bf16.vlgmr.msra.gmra.mrb[0].mxu0 %vm277_vm0, %v799_v3  ;;  %v804_v8 = vld [vmem:[%s195_s10 + $0x30] sm:$0xff]   ;;  %v805_v9 = vld [vmem:[%s195_s10 + $0x38] sm:$0xff]   ;;  %p814_p1 = scmp.lt.s32.totalorder %s812_s8, %s806_s5 }
  0x1c   : > { %682 = vmatprep.mubr.msk.bf16.mxu0 %vm277_vm0, %v800_v4 }
  0x1d   : > { %p815_p2 = por %p814_p1, %p813_p0 }
  0x1f   : > { %p816_p3 = pnand %p815_p2, %p809_p13 }
  0x23   : > { %683 = vmatmul.mubr.msk.bf16.gmra.mrb[4].mxu0 %vm277_vm0, %v801_v5 }
  0x24   : > { %686 = vmatprep.mubr.msk.bf16.mxu0 %vm277_vm0, %v802_v6 }
  0x2b   : > { %687 = vmatmul.mubr.msk.bf16.gmra.mrb[8].mxu0 %vm277_vm0, %v803_v7 }
  0x2c   : > { %690 = vmatprep.mubr.msk.bf16.mxu0 %vm277_vm0, %v804_v8 }
  0x33   : > { %691 = vmatmul.mubr.msk.bf16.gmra.mrb[12].mxu0 %vm277_vm0, %v805_v9 }
  0xee   : > { %v680_v13 = vpop.f32.mrb[0].mxu0 }
  0xef   : > { %v345_v14 = vadd.f32 %v680_v13, %v593_v12  ;;  %v336_v15 = vpop.f32.mrb[1].mxu0 }
  0xf0   : > { %v337_v16 = vadd.f32 %v593_v12, %v336_v15  ;;  %v681_v17 = vpop.f32.mrb[2].mxu0 }
  0xf1   : > { %v348_v18 = vadd.f32 %v681_v17, %v593_v12  ;;  %v339_v19 = vpop.f32.mrb[3].mxu0  ;;  %vm401_vm2 = vcmp.gt.f32.partialorder %v345_v14, 0.0 }
  0xf2   : > { %v340_v20 = vadd.f32 %v593_v12, %v339_v19  ;;  %vm399_vm4 = vcmp.gt.f32.partialorder %v337_v16, 0.0 }
  0xf3   : > { %vm402_vm3 = vcmp.gt.f32.partialorder %v348_v18, 0.0 }
  0xf4   : > { %vm970_vm5 = vmpackc.low %vm402_vm3, %vm401_vm2  ;;  %vm400_vm6 = vcmp.gt.f32.partialorder %v340_v20, 0.0 }
  0xf5   : > { %vm730_vm7 = vmpackc.low %vm400_vm6, %vm399_vm4 }
  0xf6   : > { %731 = vmatpush3.bf16.xpose.msk.msra.mxu1 %vm730_vm7, %v873_v22  ;;  %v684_v23 = vpop.f32.mrb[4].mxu0 }
  0xf7   : > { %v361_v24 = vadd.f32 %v684_v23, %v593_v12  ;;  %v352_v25 = vpop.f32.mrb[5].mxu0  ;;  %732 = vmatprep.subr.bf16.mxu1 %v870_v10 }
  0xf8   : > { %v353_v26 = vadd.f32 %v593_v12, %v352_v25  ;;  %v685_v27 = vpop.f32.mrb[6].mxu0 }
  0xf9   : > { %vm405_vm8 = vcmp.gt.f32.partialorder %v361_v24, 0.0  ;;  %v364_v28 = vadd.f32 %v685_v27, %v593_v12  ;;  %v355_v29 = vpop.f32.mrb[7].mxu0 }
  0xfa   : > { %vm403_vm9 = vcmp.gt.f32.partialorder %v353_v26, 0.0  ;;  %v356_v30 = vadd.f32 %v593_v12, %v355_v29 }
  0xfb   : > { %vm406_vm10 = vcmp.gt.f32.partialorder %v364_v28, 0.0 }
  0xfc   : > { %vm975_vm11 = vmpackc.low %vm406_vm10, %vm405_vm8  ;;  %vm404_vm12 = vcmp.gt.f32.partialorder %v356_v30, 0.0 }
  0xfd   : > { %vm979_vm13 = vmpackc.low %vm404_vm12, %vm403_vm9 }
  0xfe   : > { %734 = vmatpush3.bf16.xpose.msk.msra.mxu1 %vm970_vm5, %v873_v22  ;;  %v688_v33 = vpop.f32.mrb[8].mxu0 }
  0xff   : > { %735 = vmatprep.subr.bf16.mxu1 %v870_v10  ;;  %v377_v34 = vadd.f32 %v688_v33, %v593_v12  ;;  %v368_v35 = vpop.f32.mrb[9].mxu0 }
 0x100   : > { %v369_v36 = vadd.f32 %v593_v12, %v368_v35  ;;  %v689_v37 = vpop.f32.mrb[10].mxu0 }
 0x101   : > { %vm409_vm14 = vcmp.gt.f32.partialorder %v377_v34, 0.0  ;;  %v380_v38 = vadd.f32 %v689_v37, %v593_v12  ;;  %v371_v39 = vpop.f32.mrb[11].mxu0 }
 0x102   : > { %vm407_vm15 = vcmp.gt.f32.partialorder %v369_v36, 0.0  ;;  %v372_v40 = vadd.f32 %v593_v12, %v371_v39 }
 0x103   : > { %vm410_vm0 = vcmp.gt.f32.partialorder %v380_v38, 0.0 }
 0x104   : > { %vm986_vm1 = vmpackc.low %vm410_vm0, %vm409_vm14  ;;  %vm408_vm2 = vcmp.gt.f32.partialorder %v372_v40, 0.0 }
 0x105   : > { %vm990_vm3 = vmpackc.low %vm408_vm2, %vm407_vm15 }
 0x106   : > { %737 = vmatpush3.bf16.xpose.msk.msra.mxu1 %vm979_vm13, %v873_v22  ;;  %v692_v43 = vpop.f32.mrb[12].mxu0 }
 0x107   : > { %738 = vmatprep.subr.bf16.mxu1 %v870_v10  ;;  %v393_v44 = vadd.f32 %v692_v43, %v593_v12  ;;  %v384_v45 = vpop.f32.mrb[13].mxu0 }
 0x108   : > { %v385_v46 = vadd.f32 %v593_v12, %v384_v45  ;;  %v693_v47 = vpop.f32.mrb[14].mxu0 }
 0x109   : > { %vm413_vm4 = vcmp.gt.f32.partialorder %v393_v44, 0.0  ;;  %v396_v48 = vadd.f32 %v693_v47, %v593_v12  ;;  %v387_v49 = vpop.f32.mrb[15].mxu0 }
 0x10a   : > { %vm411_vm5 = vcmp.gt.f32.partialorder %v385_v46, 0.0  ;;  %v388_v50 = vadd.f32 %v593_v12, %v387_v49 }
 0x10b   : > { %vm414_vm6 = vcmp.gt.f32.partialorder %v396_v48, 0.0 }
 0x10c   : > { %vm751_vm7 = vmpackc.low %vm414_vm6, %vm413_vm4  ;;  %vm412_vm8 = vcmp.gt.f32.partialorder %v388_v50, 0.0 }
 0x10d   : > { %vm748_vm9 = vmpackc.low %vm412_vm8, %vm411_vm5 }
 0x10e   : > { %740 = vmatpush3.bf16.xpose.msk.msra.mxu1 %vm975_vm11, %v873_v22 }
 0x10f   : > { %741 = vmatprep.subr.bf16.mxu1 %v870_v10 }
 0x116   : > { %743 = vmatpush3.bf16.xpose.msk.msra.mxu1 %vm990_vm3, %v873_v22 }
 0x117   : > { %744 = vmatprep.subr.bf16.mxu1 %v870_v10 }
 0x11e   : > { %746 = vmatpush3.bf16.xpose.msk.msra.mxu1 %vm986_vm1, %v873_v22 }
 0x11f   : > { %747 = vmatprep.subr.bf16.mxu1 %v870_v10 }
 0x126   : > { %749 = vmatpush3.bf16.xpose.msk.msra.mxu1 %vm748_vm9, %v873_v22 }
 0x127   : > { %750 = vmatprep.subr.bf16.mxu1 %v870_v10 }
 0x12e   : > { %752 = vmatpush3.bf16.xpose.msk.msra.mxu1 %vm751_vm7, %v873_v22 }
 0x135   : > { %727 = vmatmul.mubr.f32.vlgmr.msra.gmra.mrb[0].mxu1 %v447_v51 }
 0x208   : > { %v514_v52 = vpop.f32.mrb[0].mxu1 }
 0x209   : > { %518 = vst [vmem:[%s190_s20] sm:$0x1] %v514_v52  ;;  %v728_v53 = vpop.f32.mrb[1].mxu1 }
 0x20a   : > { %819 = shalt.err (!%p816_p3)
}
 0x20b   : > { %s820_s29 = scalar_lea.hbm %s1017_s28, 16  ;;  %s824_s11 = scalar_lea.hbm %s1061_s4, 32 }
 0x20c   : > { %p821_p4 = scmp.ne.s32.totalorder %s1017_s28, %s820_s29  ;;  %p825_p9 = scmp.lt.u32.totalorder %s1017_s28, %s1061_s4 }
 0x20d   : > { %p826_p10 = scmp.lt.u32.totalorder %s824_s11, %s820_s29  ;;  %p828_p12 = scmp.lt.u32.totalorder %s820_s29, %s1017_s28 }
 0x20e   : > { %p822_p7 = pnand %p821_p4, %p935_p5 }
 0x20f   : > { %p827_p11 = por %p826_p10, %p825_p9 }
 0x210   : > { %p823_p8 = pneg %p822_p7 }
 0x211   : > { %p829_p13 = por %p828_p12, %p827_p11 }
 0x213   : > { %p830_p0 = pnand %p829_p13, %p823_p8 }
 0x215   : > { %833 = shalt.err (!%p830_p0)
}
 0x216   : > { %753 = dma.vmem_to_hbm [thread:$0]  (%p935_p5), %s1011_s22, 16, %s1017_s28, %s520_s30  }
 0x217 PF: > { %p759_p1 = scmp.ge.s32.totalorder %s868_s18, 2  ;;  %s544_s14 = sand.u32 1, %s856_s15  }
 0x218   : > { %s545_s19 = scalar_lea.sflag [#allocation3], %s544_s14 }
 0x219   : > { %p756_p2 = pnand %p759_p1, %p939_p6 }
 0x21b   : > { %851 = dma.done.wait (!%p756_p2), %s545_s19, 16  }
 0x21c   : > { %853 = vsyncadd (!%p756_p2), %s545_s19, 4294967280  ;;  %p14_p3 = scmp.ge.s32.totalorder %s923_s21, 4   ;;  %s1074_s15 = smov %s860_s16 }
 0x21d   : > { %s1075_s16 = smov %s864_s17  ;;  %s1076_s17 = smov %s933_s24 }
 0x21e   : > { %s1077_s18 = smov %s923_s21  ;;  %16 = sbr.rel (!%p14_p3) target bundleno = 3 (0x3), region = 71 }
 0x225   :  { %549 = vsyncpa [#allocation3], 1 }
 0x226   :  { %551 = vsyncpa [#allocation3 + $0x1], 1 }

</bundles_post_ra>
